<compile_context>
chip_gen: v7x
topology: tpu7x:2x2x1
jax: 0.10.0
libtpu: 0.0.40
codegen_flags: <defaults>
</compile_context>

<pallas_src>
import numpy as np
import jax
import jax.numpy as jnp
from jax.experimental import pallas as pl
from jax.experimental.pallas import tpu as pltpu

# ----------------------------- config (small, consistent with __init__) -----------------------------
B           = 2
INPUT_SIZE  = 16          # embedding dim
VOCAB       = 20
HIDDEN      = 32
OUTPUT_SIZE = 20
N_HEAD      = 2
D_MODEL     = 16          # equals INPUT_SIZE (dec_input feeds MultiHeadAttention + residual)
D_K         = 8
D_V         = 8
MAX_LENGTH  = 16          # encoder attention span (attn Linear output size)
TGT_MAX_LEN = 12
L           = 8           # decoder sequence length
PAD_TOKEN   = 0
LN_EPS      = 1e-5
NEG_INF     = -1e30       # additive mask value; exp underflows cleanly to 0 in f32

OUT_LANES   = 128         # packed output width (out | hnew | attn_w | pad)


# ----------------------------------------- Pallas kernel -------------------------------------------
def attn_decoder_kernel(
    act_ref,        # (B, 50)  [emb0 | hid0 | position]
    enc_ref,        # (B, MAX_LENGTH, HIDDEN)
    dec_in_ref,     # (B, L, D_MODEL)
    npm_ref,        # (B, L, 1)     non-pad mask
    addmask_ref,    # (B, L, L)     additive self-attn mask (0 / NEG_INF)
    w_attn_ref,     # (48, MAX_LENGTH)
    w_qkv_ref,      # (D_MODEL, 3*N_HEAD*D_K) = (16, 48)
    w_fc_ref,       # (N_HEAD*D_V, D_MODEL)   = (16, 16)
    ln_ref,         # (2, D_MODEL)  row0 = gamma, row1 = beta
    w_comb_ref,     # (66, HIDDEN)
    w_ih_ref,       # (HIDDEN, 3*HIDDEN)  gates r|z|n
    w_hh_ref,       # (HIDDEN, 3*HIDDEN)  gates r|z|n
    w_out_ref,      # (HIDDEN, OUTPUT_SIZE)
    bias_ref,       # (8, 128)  rows: b_attn | b_qkv | b_fc | b_comb | b_ih | b_hh | b_out | 0
    out_ref,        # (B, 128)  packed: out[0:20] | hnew[20:52] | attn_w[52:68] | pad
):
    f32 = jnp.float32

    act     = act_ref[...]
    emb0    = act[:, :INPUT_SIZE]                       # (B, 16)
    hid0    = act[:, INPUT_SIZE:INPUT_SIZE + HIDDEN]    # (B, 32)
    pos     = act[:, INPUT_SIZE + HIDDEN:]              # (B, 2)
    enc     = enc_ref[...]
    dec_in  = dec_in_ref[...]
    npm     = npm_ref[...]
    addmask = addmask_ref[...]
    biases  = bias_ref[...]

    # ---- attn_weights = softmax(Linear(cat(embedded, hidden))) — single fused matmul ----
    logits = (jnp.dot(act[:, :INPUT_SIZE + HIDDEN], w_attn_ref[...],
                      preferred_element_type=f32)
              + biases[0:1, :MAX_LENGTH])
    logits = logits - jnp.max(logits, axis=-1, keepdims=True)
    e = jnp.exp(logits)
    attn_w = e * pl.reciprocal(jnp.sum(e, axis=-1, keepdims=True), approx=True)   # (B, MAX_LENGTH)

    # ---- attn_applied = bmm(attn_w.unsqueeze(1), encoder_outputs)[:, 0] (batched dot) ----
    attn_applied = jnp.einsum('bqm,bmh->bqh', attn_w[:, None, :], enc,
                              preferred_element_type=f32)[:, 0, :]                # (B, HIDDEN)

    # ---- MultiHeadAttention: head-merged QKV projection + per-head tiny score blocks ----
    dec_flat = dec_in.reshape(B * L, D_MODEL)                                     # (16, 16)
    qkv = (jnp.dot(dec_flat, w_qkv_ref[...], preferred_element_type=f32)
           + biases[1:2, :3 * N_HEAD * D_K])                                      # (16, 48)
    scale = 1.0 / (D_K ** 0.5)
    q_off, k_off, v_off = 0, N_HEAD * D_K, 2 * N_HEAD * D_K

    ctx_heads = []
    for h in range(N_HEAD):                                                       # static, N_HEAD=2
        qh = qkv[:, q_off + h * D_K: q_off + (h + 1) * D_K].reshape(B, L, D_K)
        kh = qkv[:, k_off + h * D_K: k_off + (h + 1) * D_K].reshape(B, L, D_K)
        vh = qkv[:, v_off + h * D_V: v_off + (h + 1) * D_V].reshape(B, L, D_V)
        sc = jnp.einsum('blk,bmk->blm', qh, kh, preferred_element_type=f32) * scale
        sc = sc + addmask                                                         # additive mask
        sc = sc - jnp.max(sc, axis=-1, keepdims=True)
        p = jnp.exp(sc)
        p = p * pl.reciprocal(jnp.sum(p, axis=-1, keepdims=True), approx=True)    # dropout = id
        oh = jnp.einsum('blm,bmv->blv', p, vh, preferred_element_type=f32)
        ctx_heads.append(oh.reshape(B * L, D_V))
    ctx = jnp.concatenate(ctx_heads, axis=-1)                                     # (B*L, N_HEAD*D_V)
    mha = (jnp.dot(ctx, w_fc_ref[...], preferred_element_type=f32)
           + biases[2:3, :D_MODEL])                                               # (B*L, D_MODEL)

    # residual + LayerNorm + non-pad mask
    resid = mha.reshape(B, L, D_MODEL) + dec_in
    mu  = jnp.mean(resid, axis=-1, keepdims=True)
    var = jnp.mean(jnp.square(resid - mu), axis=-1, keepdims=True)
    ln = ln_ref[...]
    dec_out = (resid - mu) * jax.lax.rsqrt(var + LN_EPS) * ln[0:1, :] + ln[1:2, :]
    dec_out = dec_out * npm
    dec_last = dec_out[:, L - 1, :]                                               # (B, D_MODEL)

    # ---- attn_combine(cat(embedded, attn_applied, position, dec_output)) + relu — 1 matmul ----
    comb_in = jnp.concatenate([emb0, attn_applied, pos, dec_last], axis=-1)       # (B, 66)
    x = (jnp.dot(comb_in, w_comb_ref[...], preferred_element_type=f32)
         + biases[3:4, :HIDDEN])
    x = jnp.maximum(x, 0.0)                                                       # (B, HIDDEN)

    # ---- single-step GRU: 2 fused gate matmuls, gate order r|z|n (torch.nn.GRU) ----
    gx = jnp.dot(x,    w_ih_ref[...], preferred_element_type=f32) + biases[4:5, :3 * HIDDEN]
    gh = jnp.dot(hid0, w_hh_ref[...], preferred_element_type=f32) + biases[5:6, :3 * HIDDEN]
    r = jax.nn.sigmoid(gx[:, :HIDDEN]            + gh[:, :HIDDEN])
    z = jax.nn.sigmoid(gx[:, HIDDEN:2 * HIDDEN]  + gh[:, HIDDEN:2 * HIDDEN])
    n = jnp.tanh(gx[:, 2 * HIDDEN:] + r * gh[:, 2 * HIDDEN:])
    hnew = (1.0 - z) * n + z * hid0                                               # (B, HIDDEN)

    # ---- output projection ----
    out = jnp.dot(hnew, w_out_ref[...], preferred_element_type=f32) + biases[6:7, :OUTPUT_SIZE]

    # ---- single lane-dense 128-wide packed store (one unmasked vst, one output DMA) ----
    pad = jnp.zeros((B, OUT_LANES - (OUTPUT_SIZE + HIDDEN + MAX_LENGTH)), dtype=f32)
    out_ref[...] = jnp.concatenate([out, hnew, attn_w, pad], axis=-1)


# ----------------------------------------- wrapper (glue) ------------------------------------------
def get_sinusoid_encoding_table(n_position, d_hid, padding_idx=None):
    def cal_angle(position, hid_idx):
        return position / np.power(10000, 2 * (hid_idx // 2) / d_hid)
    table = np.array([[cal_angle(p, j) for j in range(d_hid)] for p in range(n_position)],
                     dtype=np.float64)
    table[:, 0::2] = np.sin(table[:, 0::2])
    table[:, 1::2] = np.cos(table[:, 1::2])
    if padding_idx is not None:
        table[padding_idx] = 0.0
    return jnp.asarray(table, dtype=jnp.float32)


def _make_masks(dec_seq):
    non_pad = (dec_seq != PAD_TOKEN).astype(jnp.float32)[:, :, None]            # (B, L, 1)
    subseq = jnp.triu(jnp.ones((L, L), jnp.float32), k=1)[None, :, :]           # (1, L, L)
    keypad = (dec_seq == PAD_TOKEN).astype(jnp.float32)[:, None, :]             # (B, 1, L)
    masked = ((keypad + subseq) > 0).astype(jnp.float32)                        # (B, L, L)
    add_mask = masked * NEG_INF                                                 # additive mask
    return non_pad, add_mask


def pack_params(p):
    """One-time host-side packing of the logical (PyTorch-shaped) params into dense kernel operands."""
    packed = {'embedding': p['embedding'], 'position_enc': p['position_enc']}
    # attn Linear over cat(emb, hid)
    packed['w_attn'] = jnp.concatenate([p['w_attn_e'], p['w_attn_h']], axis=0)           # (48, 16)
    # head-merged QKV and FC
    wq_m = jnp.concatenate([p['wq'][h] for h in range(N_HEAD)], axis=1)                  # (16, 16)
    wk_m = jnp.concatenate([p['wk'][h] for h in range(N_HEAD)], axis=1)
    wv_m = jnp.concatenate([p['wv'][h] for h in range(N_HEAD)], axis=1)
    packed['w_qkv'] = jnp.concatenate([wq_m, wk_m, wv_m], axis=1)                        # (16, 48)
    bq_m = jnp.concatenate([p['bq'][h] for h in range(N_HEAD)], axis=1)                  # (1, 16)
    bk_m = jnp.concatenate([p['bk'][h] for h in range(N_HEAD)], axis=1)
    bv_m = jnp.concatenate([p['bv'][h] for h in range(N_HEAD)], axis=1)
    b_qkv = jnp.concatenate([bq_m, bk_m, bv_m], axis=1)                                  # (1, 48)
    packed['w_fc'] = jnp.concatenate([p['wfc'][h] for h in range(N_HEAD)], axis=0)       # (16, 16)
    packed['ln'] = jnp.concatenate([p['ln_g'], p['ln_b']], axis=0)                       # (2, 16)
    # attn_combine over cat(emb, attn_applied, pos, dec_last)
    packed['w_comb'] = jnp.concatenate(
        [p['wcomb_e'], p['wcomb_a'], p['wcomb_p'], p['wcomb_d']], axis=0)                # (66, 32)
    # GRU gates r|z|n packed on lanes
    packed['w_ih'] = jnp.concatenate([p['wih'][g] for g in range(3)], axis=1)            # (32, 96)
    packed['w_hh'] = jnp.concatenate([p['whh'][g] for g in range(3)], axis=1)            # (32, 96)
    packed['w_out'] = p['wout']                                                          # (32, 20)
    # all biases in one (8, 128) lane-dense buffer, one row per bias vector
    bias_rows = [
        p['b_attn'][0],                                              # 16
        b_qkv[0],                                                    # 48
        p['bfc'][0],                                                 # 16
        p['bcomb'][0],                                               # 32
        jnp.concatenate([p['bih'][g][0] for g in range(3)]),         # 96
        jnp.concatenate([p['bhh'][g][0] for g in range(3)]),         # 96
        p['bout'][0],                                                # 20
    ]
    bp = jnp.zeros((8, OUT_LANES), jnp.float32)
    for i, row in enumerate(bias_rows):
        bp = bp.at[i, :row.shape[0]].set(row)
    packed['biases'] = bp
    return packed


def attn_decoder_forward(packed, input_ids, hidden, encoder_outputs, position, dec_seq, dec_pos):
    emb_table = packed['embedding']
    pos_table = packed['position_enc']

    emb0 = jnp.take(emb_table, input_ids, axis=0)[:, 0, :]                       # dropout = identity
    hid0 = hidden[0]
    act = jnp.concatenate([emb0, hid0, position], axis=-1).astype(jnp.float32)   # (B, 50)
    dec_in = (jnp.take(emb_table, dec_seq, axis=0)
              + jnp.take(pos_table, dec_pos, axis=0)).astype(jnp.float32)        # (B, L, D_MODEL)
    non_pad, add_mask = _make_masks(dec_seq)

    vmem = pl.BlockSpec(memory_space=pltpu.MemorySpace.VMEM)
    ins = [
        act, encoder_outputs, dec_in, non_pad, add_mask,
        packed['w_attn'], packed['w_qkv'], packed['w_fc'], packed['ln'],
        packed['w_comb'], packed['w_ih'], packed['w_hh'], packed['w_out'],
        packed['biases'],
    ]
    packed_out = pl.pallas_call(
        attn_decoder_kernel,
        out_shape=jax.ShapeDtypeStruct((B, OUT_LANES), jnp.float32),
        in_specs=[vmem] * len(ins),
        out_specs=vmem,
    )(*ins)

    out    = packed_out[:, :OUTPUT_SIZE]
    hnew   = packed_out[:, OUTPUT_SIZE:OUTPUT_SIZE + HIDDEN]
    attn_w = packed_out[:, OUTPUT_SIZE + HIDDEN:OUTPUT_SIZE + HIDDEN + MAX_LENGTH]
    return out, hnew[None, :, :], attn_w


# ------------------------------------ pure-JAX reference (sanity) ----------------------------------
def _ref_forward(params, input_ids, hidden, encoder_outputs, position, dec_seq, dec_pos):
    emb_table = params['embedding']
    pos_table = params['position_enc']
    emb0 = jnp.take(emb_table, input_ids, axis=0)[:, 0, :]
    hid0 = hidden[0]
    dec_in = jnp.take(emb_table, dec_seq, axis=0) + jnp.take(pos_table, dec_pos, axis=0)
    non_pad, add_mask = _make_masks(dec_seq)

    attn_w = jax.nn.softmax(emb0 @ params['w_attn_e'] + hid0 @ params['w_attn_h'] + params['b_attn'], axis=1)
    attn_applied = jnp.einsum('bm,bmh->bh', attn_w, encoder_outputs)

    q = jnp.einsum('bld,hdk->bhlk', dec_in, params['wq']) + params['bq'][None]
    k = jnp.einsum('bld,hdk->bhlk', dec_in, params['wk']) + params['bk'][None]
    v = jnp.einsum('bld,hdv->bhlv', dec_in, params['wv']) + params['bv'][None]
    sc = jnp.einsum('bhlk,bhmk->bhlm', q, k) / (D_K ** 0.5) + add_mask[:, None]
    p = jax.nn.softmax(sc, axis=-1)
    oh = jnp.einsum('bhlm,bhmv->bhlv', p, v)
    mha = jnp.einsum('bhlv,hvd->bld', oh, params['wfc']) + params['bfc']
    resid = mha + dec_in
    mu = resid.mean(-1, keepdims=True)
    var = ((resid - mu) ** 2).mean(-1, keepdims=True)
    dec_out = (resid - mu) / jnp.sqrt(var + LN_EPS) * params['ln_g'] + params['ln_b']
    dec_out = dec_out * non_pad
    dec_last = dec_out[:, -1, :]

    x = jax.nn.relu(emb0 @ params['wcomb_e'] + attn_applied @ params['wcomb_a']
                    + position @ params['wcomb_p'] + dec_last @ params['wcomb_d'] + params['bcomb'])
    r = jax.nn.sigmoid(x @ params['wih'][0] + params['bih'][0] + hid0 @ params['whh'][0] + params['bhh'][0])
    z = jax.nn.sigmoid(x @ params['wih'][1] + params['bih'][1] + hid0 @ params['whh'][1] + params['bhh'][1])
    n = jnp.tanh(x @ params['wih'][2] + params['bih'][2] + r * (hid0 @ params['whh'][2] + params['bhh'][2]))
    hnew = (1.0 - z) * n + z * hid0
    out = hnew @ params['wout'] + params['bout']
    return out, hnew[None], attn_w


# ------------------------------------------ parameter init -----------------------------------------
def init_params(key):
    ks = jax.random.split(key, 24)
    it = iter(ks)

    def rn(shape, scale=0.1):
        return (scale * jax.random.normal(next(it), shape)).astype(jnp.float32)

    p = {}
    p['embedding']    = rn((VOCAB, INPUT_SIZE), 1.0)                     # frozen pretrained emb (synthetic)
    p['position_enc'] = get_sinusoid_encoding_table(TGT_MAX_LEN, INPUT_SIZE, padding_idx=0)
    # attn: Linear(hidden + input, max_length)  split by concat order (embedded | hidden)
    p['w_attn_e'] = rn((INPUT_SIZE, MAX_LENGTH))
    p['w_attn_h'] = rn((HIDDEN, MAX_LENGTH))
    p['b_attn']   = rn((1, MAX_LENGTH))
    # MultiHeadAttention
    p['wq'] = rn((N_HEAD, D_MODEL, D_K)); p['bq'] = rn((N_HEAD, 1, D_K))
    p['wk'] = rn((N_HEAD, D_MODEL, D_K)); p['bk'] = rn((N_HEAD, 1, D_K))
    p['wv'] = rn((N_HEAD, D_MODEL, D_V)); p['bv'] = rn((N_HEAD, 1, D_V))
    p['wfc'] = rn((N_HEAD, D_V, D_MODEL)); p['bfc'] = rn((1, D_MODEL))
    p['ln_g'] = jnp.ones((1, D_MODEL), jnp.float32)
    p['ln_b'] = jnp.zeros((1, D_MODEL), jnp.float32)
    # attn_combine: Linear(hidden + input + 2 + d_model, hidden), split by concat order
    p['wcomb_e'] = rn((INPUT_SIZE, HIDDEN))
    p['wcomb_a'] = rn((HIDDEN, HIDDEN))
    p['wcomb_p'] = rn((2, HIDDEN))
    p['wcomb_d'] = rn((D_MODEL, HIDDEN))
    p['bcomb']   = rn((1, HIDDEN))
    # GRU(hidden, hidden), single layer, single step; gates (r, z, n)
    p['wih'] = rn((3, HIDDEN, HIDDEN)); p['bih'] = rn((3, 1, HIDDEN))
    p['whh'] = rn((3, HIDDEN, HIDDEN)); p['bhh'] = rn((3, 1, HIDDEN))
    # out: Linear(hidden, output_size)
    p['wout'] = rn((HIDDEN, OUTPUT_SIZE)); p['bout'] = rn((1, OUTPUT_SIZE))
    return p


# ----------------------------------------------- main ----------------------------------------------
if __name__ == "__main__":
    key = jax.random.PRNGKey(0)
    pkey, k1, k2, k3, k4, k5 = jax.random.split(key, 6)
    params = init_params(pkey)
    packed = pack_params(params)                 # one-time host-side weight packing

    input_ids = jax.random.randint(k1, (B, 1), 1, VOCAB, dtype=jnp.int32)
    hidden = jax.random.uniform(k2, (1, B, HIDDEN), dtype=jnp.float32)
    encoder_outputs = jax.random.normal(k3, (B, MAX_LENGTH, HIDDEN), dtype=jnp.float32)
    position = jax.random.normal(k4, (B, 2), dtype=jnp.float32)
    dec_seq = jax.random.randint(k5, (B, L), 1, VOCAB, dtype=jnp.int32)       # no PAD in this example
    dec_pos = jnp.tile(jnp.arange(1, L + 1, dtype=jnp.int32)[None, :], (B, 1))

    out, hnew, attn_w = attn_decoder_forward(packed, input_ids, hidden, encoder_outputs,
                                             position, dec_seq, dec_pos)
    jax.block_until_ready((out, hnew, attn_w))

    # sanity check against a pure-JAX reference of the same math (unpacked params)
    ref_out, ref_hnew, ref_attn = _ref_forward(params, input_ids, hidden, encoder_outputs,
                                               position, dec_seq, dec_pos)
    assert out.shape == (B, OUTPUT_SIZE)
    assert hnew.shape == (1, B, HIDDEN)
    assert attn_w.shape == (B, MAX_LENGTH)
    # slightly looser tolerance: approx EUP reciprocal in the softmaxes (~1e-4 rel)
    np.testing.assert_allclose(np.asarray(out), np.asarray(ref_out), rtol=1e-2, atol=1e-2)
    np.testing.assert_allclose(np.asarray(hnew), np.asarray(ref_hnew), rtol=1e-2, atol=1e-2)
    np.testing.assert_allclose(np.asarray(attn_w), np.asarray(ref_attn), rtol=1e-2, atol=1e-2)

    print("KERNEL_OK")
</pallas_src>

<mosaic_0001>
module attributes {stable_mosaic.version = 11 : i64} {
  func.func @attn_decoder_kernel(%arg0: memref<2x50xf32, #tpu.memory_space<vmem>>, %arg1: memref<2x16x32xf32, #tpu.memory_space<vmem>>, %arg2: memref<2x8x16xf32, #tpu.memory_space<vmem>>, %arg3: memref<2x8x1xf32, #tpu.memory_space<vmem>>, %arg4: memref<2x8x8xf32, #tpu.memory_space<vmem>>, %arg5: memref<48x16xf32, #tpu.memory_space<vmem>>, %arg6: memref<16x48xf32, #tpu.memory_space<vmem>>, %arg7: memref<16x16xf32, #tpu.memory_space<vmem>>, %arg8: memref<2x16xf32, #tpu.memory_space<vmem>>, %arg9: memref<66x32xf32, #tpu.memory_space<vmem>>, %arg10: memref<32x96xf32, #tpu.memory_space<vmem>>, %arg11: memref<32x96xf32, #tpu.memory_space<vmem>>, %arg12: memref<32x20xf32, #tpu.memory_space<vmem>>, %arg13: memref<8x128xf32, #tpu.memory_space<vmem>>, %arg14: memref<2x128xf32, #tpu.memory_space<vmem>>) attributes {dimension_semantics = [], scalar_prefetch = 0 : i64, scratch_operands = 0 : i64, tpu.core_type = #tpu.core_type<tc>} {
    %c0 = arith.constant 0 : index
    %c0_0 = arith.constant 0 : index
    %0 = vector.load %arg0[%c0, %c0_0] : memref<2x50xf32, #tpu.memory_space<vmem>>, vector<2x50xf32>
    %1 = vector.extract_strided_slice %0 {offsets = [0, 0], sizes = [2, 16], strides = [1, 1]} : vector<2x50xf32> to vector<2x16xf32>
    %2 = vector.extract_strided_slice %0 {offsets = [0, 16], sizes = [2, 32], strides = [1, 1]} : vector<2x50xf32> to vector<2x32xf32>
    %3 = vector.extract_strided_slice %0 {offsets = [0, 48], sizes = [2, 2], strides = [1, 1]} : vector<2x50xf32> to vector<2x2xf32>
    %c0_1 = arith.constant 0 : index
    %c0_2 = arith.constant 0 : index
    %c0_3 = arith.constant 0 : index
    %4 = vector.load %arg1[%c0_1, %c0_2, %c0_3] : memref<2x16x32xf32, #tpu.memory_space<vmem>>, vector<2x16x32xf32>
    %c0_4 = arith.constant 0 : index
    %c0_5 = arith.constant 0 : index
    %c0_6 = arith.constant 0 : index
    %5 = vector.load %arg2[%c0_4, %c0_5, %c0_6] : memref<2x8x16xf32, #tpu.memory_space<vmem>>, vector<2x8x16xf32>
    %c0_7 = arith.constant 0 : index
    %c0_8 = arith.constant 0 : index
    %c0_9 = arith.constant 0 : index
    %6 = vector.load %arg3[%c0_7, %c0_8, %c0_9] : memref<2x8x1xf32, #tpu.memory_space<vmem>>, vector<2x8x1xf32>
    %c0_10 = arith.constant 0 : index
    %c0_11 = arith.constant 0 : index
    %c0_12 = arith.constant 0 : index
    %7 = vector.load %arg4[%c0_10, %c0_11, %c0_12] : memref<2x8x8xf32, #tpu.memory_space<vmem>>, vector<2x8x8xf32>
    %c0_13 = arith.constant 0 : index
    %c0_14 = arith.constant 0 : index
    %8 = vector.load %arg13[%c0_13, %c0_14] : memref<8x128xf32, #tpu.memory_space<vmem>>, vector<8x128xf32>
    %9 = vector.extract_strided_slice %0 {offsets = [0, 0], sizes = [2, 48], strides = [1, 1]} : vector<2x50xf32> to vector<2x48xf32>
    %c0_15 = arith.constant 0 : index
    %c0_16 = arith.constant 0 : index
    %10 = vector.load %arg5[%c0_15, %c0_16] : memref<48x16xf32, #tpu.memory_space<vmem>>, vector<48x16xf32>
    %cst = arith.constant dense<0.000000e+00> : vector<2x16xf32>
    %11 = tpu.matmul %9, %10, %cst {dimension_numbers = #tpu.dot_dimension_numbers<[1], [0], [0], [1], [0, 0, 1, 1], [], []>} : vector<2x48xf32>, vector<48x16xf32>, vector<2x16xf32> -> vector<2x16xf32>
    %12 = vector.extract_strided_slice %8 {offsets = [0, 0], sizes = [1, 16], strides = [1, 1]} : vector<8x128xf32> to vector<1x16xf32>
    %13 = vector.broadcast %12 : vector<1x16xf32> to vector<2x16xf32>
    %14 = arith.addf %11, %13 : vector<2x16xf32>
    %cst_17 = arith.constant dense<0xFF800000> : vector<2xf32>
    %15 = vector.multi_reduction <maximumf>, %14, %cst_17 [1] : vector<2x16xf32> to vector<2xf32>
    %16 = vector.shape_cast %15 : vector<2xf32> to vector<2x1xf32>
    %17 = vector.broadcast %16 : vector<2x1xf32> to vector<2x16xf32>
    %18 = arith.subf %14, %17 : vector<2x16xf32>
    %19 = math.exp %18 : vector<2x16xf32>
    %cst_18 = arith.constant dense<0.000000e+00> : vector<2xf32>
    %20 = vector.multi_reduction <add>, %19, %cst_18 [1] : vector<2x16xf32> to vector<2xf32>
    %21 = vector.shape_cast %20 : vector<2xf32> to vector<2x1xf32>
    %22 = tpu.reciprocal %21 {approx = true} : vector<2x1xf32> -> vector<2x1xf32>
    %23 = vector.broadcast %22 : vector<2x1xf32> to vector<2x16xf32>
    %24 = arith.mulf %19, %23 : vector<2x16xf32>
    %25 = vector.shape_cast %24 : vector<2x16xf32> to vector<2x1x16xf32>
    "tpu.trace_start"() <{level = 10 : i32, message = "bqm,bmh->bqh"}> : () -> ()
    %cst_19 = arith.constant dense<0.000000e+00> : vector<2x1x32xf32>
    %26 = tpu.matmul %25, %4, %cst_19 {dimension_numbers = #tpu.dot_dimension_numbers<[2], [1], [1], [2], [0, 0, 0, 1, 1, 2], [0], [0]>} : vector<2x1x16xf32>, vector<2x16x32xf32>, vector<2x1x32xf32> -> vector<2x1x32xf32>
    "tpu.trace_stop"() : () -> ()
    %27 = vector.shape_cast %26 : vector<2x1x32xf32> to vector<2x32xf32>
    %28 = vector.shape_cast %5 : vector<2x8x16xf32> to vector<16x16xf32>
    %c0_20 = arith.constant 0 : index
    %c0_21 = arith.constant 0 : index
    %29 = vector.load %arg6[%c0_20, %c0_21] : memref<16x48xf32, #tpu.memory_space<vmem>>, vector<16x48xf32>
    %cst_22 = arith.constant dense<0.000000e+00> : vector<16x48xf32>
    %30 = tpu.matmul %28, %29, %cst_22 {dimension_numbers = #tpu.dot_dimension_numbers<[1], [0], [0], [1], [0, 0, 1, 1], [], []>} : vector<16x16xf32>, vector<16x48xf32>, vector<16x48xf32> -> vector<16x48xf32>
    %31 = vector.extract_strided_slice %8 {offsets = [1, 0], sizes = [1, 48], strides = [1, 1]} : vector<8x128xf32> to vector<1x48xf32>
    %32 = vector.broadcast %31 : vector<1x48xf32> to vector<16x48xf32>
    %33 = arith.addf %30, %32 : vector<16x48xf32>
    %34 = vector.extract_strided_slice %33 {offsets = [0, 0], sizes = [16, 8], strides = [1, 1]} : vector<16x48xf32> to vector<16x8xf32>
    %35 = vector.shape_cast %34 : vector<16x8xf32> to vector<2x8x8xf32>
    %36 = vector.extract_strided_slice %33 {offsets = [0, 16], sizes = [16, 8], strides = [1, 1]} : vector<16x48xf32> to vector<16x8xf32>
    %37 = vector.shape_cast %36 : vector<16x8xf32> to vector<2x8x8xf32>
    %38 = vector.extract_strided_slice %33 {offsets = [0, 32], sizes = [16, 8], strides = [1, 1]} : vector<16x48xf32> to vector<16x8xf32>
    %39 = vector.shape_cast %38 : vector<16x8xf32> to vector<2x8x8xf32>
    "tpu.trace_start"() <{level = 10 : i32, message = "blk,bmk->blm"}> : () -> ()
    %cst_23 = arith.constant dense<0.000000e+00> : vector<2x8x8xf32>
    %40 = tpu.matmul %35, %37, %cst_23 {dimension_numbers = #tpu.dot_dimension_numbers<[2], [2], [1], [1], [0, 0, 0, 1, 1, 1], [0], [0]>} : vector<2x8x8xf32>, vector<2x8x8xf32>, vector<2x8x8xf32> -> vector<2x8x8xf32>
    "tpu.trace_stop"() : () -> ()
    %cst_24 = arith.constant 0.353553385 : f32
    %41 = vector.broadcast %cst_24 : f32 to vector<2x8x8xf32>
    %42 = arith.mulf %40, %41 : vector<2x8x8xf32>
    %43 = arith.addf %42, %7 : vector<2x8x8xf32>
    %cst_25 = arith.constant dense<0xFF800000> : vector<2x8xf32>
    %44 = vector.multi_reduction <maximumf>, %43, %cst_25 [2] : vector<2x8x8xf32> to vector<2x8xf32>
    %45 = vector.shape_cast %44 : vector<2x8xf32> to vector<2x8x1xf32>
    %46 = vector.broadcast %45 : vector<2x8x1xf32> to vector<2x8x8xf32>
    %47 = arith.subf %43, %46 : vector<2x8x8xf32>
    %48 = math.exp %47 : vector<2x8x8xf32>
    %cst_26 = arith.constant dense<0.000000e+00> : vector<2x8xf32>
    %49 = vector.multi_reduction <add>, %48, %cst_26 [2] : vector<2x8x8xf32> to vector<2x8xf32>
    %50 = vector.shape_cast %49 : vector<2x8xf32> to vector<2x8x1xf32>
    %51 = tpu.reciprocal %50 {approx = true} : vector<2x8x1xf32> -> vector<2x8x1xf32>
    %52 = vector.broadcast %51 : vector<2x8x1xf32> to vector<2x8x8xf32>
    %53 = arith.mulf %48, %52 : vector<2x8x8xf32>
    "tpu.trace_start"() <{level = 10 : i32, message = "blm,bmv->blv"}> : () -> ()
    %cst_27 = arith.constant dense<0.000000e+00> : vector<2x8x8xf32>
    %54 = tpu.matmul %53, %39, %cst_27 {dimension_numbers = #tpu.dot_dimension_numbers<[2], [1], [1], [2], [0, 0, 0, 1, 1, 2], [0], [0]>} : vector<2x8x8xf32>, vector<2x8x8xf32>, vector<2x8x8xf32> -> vector<2x8x8xf32>
    "tpu.trace_stop"() : () -> ()
    %55 = vector.shape_cast %54 : vector<2x8x8xf32> to vector<16x8xf32>
    %56 = vector.extract_strided_slice %33 {offsets = [0, 8], sizes = [16, 8], strides = [1, 1]} : vector<16x48xf32> to vector<16x8xf32>
    %57 = vector.shape_cast %56 : vector<16x8xf32> to vector<2x8x8xf32>
    %58 = vector.extract_strided_slice %33 {offsets = [0, 24], sizes = [16, 8], strides = [1, 1]} : vector<16x48xf32> to vector<16x8xf32>
    %59 = vector.shape_cast %58 : vector<16x8xf32> to vector<2x8x8xf32>
    %60 = vector.extract_strided_slice %33 {offsets = [0, 40], sizes = [16, 8], strides = [1, 1]} : vector<16x48xf32> to vector<16x8xf32>
    %61 = vector.shape_cast %60 : vector<16x8xf32> to vector<2x8x8xf32>
    "tpu.trace_start"() <{level = 10 : i32, message = "blk,bmk->blm"}> : () -> ()
    %cst_28 = arith.constant dense<0.000000e+00> : vector<2x8x8xf32>
    %62 = tpu.matmul %57, %59, %cst_28 {dimension_numbers = #tpu.dot_dimension_numbers<[2], [2], [1], [1], [0, 0, 0, 1, 1, 1], [0], [0]>} : vector<2x8x8xf32>, vector<2x8x8xf32>, vector<2x8x8xf32> -> vector<2x8x8xf32>
    "tpu.trace_stop"() : () -> ()
    %cst_29 = arith.constant 0.353553385 : f32
    %63 = vector.broadcast %cst_29 : f32 to vector<2x8x8xf32>
    %64 = arith.mulf %62, %63 : vector<2x8x8xf32>
    %65 = arith.addf %64, %7 : vector<2x8x8xf32>
    %cst_30 = arith.constant dense<0xFF800000> : vector<2x8xf32>
    %66 = vector.multi_reduction <maximumf>, %65, %cst_30 [2] : vector<2x8x8xf32> to vector<2x8xf32>
    %67 = vector.shape_cast %66 : vector<2x8xf32> to vector<2x8x1xf32>
    %68 = vector.broadcast %67 : vector<2x8x1xf32> to vector<2x8x8xf32>
    %69 = arith.subf %65, %68 : vector<2x8x8xf32>
    %70 = math.exp %69 : vector<2x8x8xf32>
    %cst_31 = arith.constant dense<0.000000e+00> : vector<2x8xf32>
    %71 = vector.multi_reduction <add>, %70, %cst_31 [2] : vector<2x8x8xf32> to vector<2x8xf32>
    %72 = vector.shape_cast %71 : vector<2x8xf32> to vector<2x8x1xf32>
    %73 = tpu.reciprocal %72 {approx = true} : vector<2x8x1xf32> -> vector<2x8x1xf32>
    %74 = vector.broadcast %73 : vector<2x8x1xf32> to vector<2x8x8xf32>
    %75 = arith.mulf %70, %74 : vector<2x8x8xf32>
    "tpu.trace_start"() <{level = 10 : i32, message = "blm,bmv->blv"}> : () -> ()
    %cst_32 = arith.constant dense<0.000000e+00> : vector<2x8x8xf32>
    %76 = tpu.matmul %75, %61, %cst_32 {dimension_numbers = #tpu.dot_dimension_numbers<[2], [1], [1], [2], [0, 0, 0, 1, 1, 2], [0], [0]>} : vector<2x8x8xf32>, vector<2x8x8xf32>, vector<2x8x8xf32> -> vector<2x8x8xf32>
    "tpu.trace_stop"() : () -> ()
    %77 = vector.shape_cast %76 : vector<2x8x8xf32> to vector<16x8xf32>
    %78 = tpu.concatenate %55, %77 in 1 : vector<16x8xf32>, vector<16x8xf32> -> vector<16x16xf32>
    %c0_33 = arith.constant 0 : index
    %c0_34 = arith.constant 0 : index
    %79 = vector.load %arg7[%c0_33, %c0_34] : memref<16x16xf32, #tpu.memory_space<vmem>>, vector<16x16xf32>
    %cst_35 = arith.constant dense<0.000000e+00> : vector<16x16xf32>
    %80 = tpu.matmul %78, %79, %cst_35 {dimension_numbers = #tpu.dot_dimension_numbers<[1], [0], [0], [1], [0, 0, 1, 1], [], []>} : vector<16x16xf32>, vector<16x16xf32>, vector<16x16xf32> -> vector<16x16xf32>
    %81 = vector.extract_strided_slice %8 {offsets = [2, 0], sizes = [1, 16], strides = [1, 1]} : vector<8x128xf32> to vector<1x16xf32>
    %82 = vector.broadcast %81 : vector<1x16xf32> to vector<16x16xf32>
    %83 = arith.addf %80, %82 : vector<16x16xf32>
    %84 = vector.shape_cast %83 : vector<16x16xf32> to vector<2x8x16xf32>
    %85 = arith.addf %84, %5 : vector<2x8x16xf32>
    %cst_36 = arith.constant dense<0.000000e+00> : vector<2x8xf32>
    %86 = vector.multi_reduction <add>, %85, %cst_36 [2] : vector<2x8x16xf32> to vector<2x8xf32>
    %87 = vector.shape_cast %86 : vector<2x8xf32> to vector<2x8x1xf32>
    %cst_37 = arith.constant 1.600000e+01 : f32
    %88 = vector.broadcast %cst_37 : f32 to vector<2x8x1xf32>
    %89 = arith.divf %87, %88 : vector<2x8x1xf32>
    %90 = vector.broadcast %89 : vector<2x8x1xf32> to vector<2x8x16xf32>
    %91 = arith.subf %85, %90 : vector<2x8x16xf32>
    %92 = arith.mulf %91, %91 : vector<2x8x16xf32>
    %cst_38 = arith.constant dense<0.000000e+00> : vector<2x8xf32>
    %93 = vector.multi_reduction <add>, %92, %cst_38 [2] : vector<2x8x16xf32> to vector<2x8xf32>
    %94 = vector.shape_cast %93 : vector<2x8xf32> to vector<2x8x1xf32>
    %cst_39 = arith.constant 1.600000e+01 : f32
    %95 = vector.broadcast %cst_39 : f32 to vector<2x8x1xf32>
    %96 = arith.divf %94, %95 : vector<2x8x1xf32>
    %c0_40 = arith.constant 0 : index
    %c0_41 = arith.constant 0 : index
    %97 = vector.load %arg8[%c0_40, %c0_41] : memref<2x16xf32, #tpu.memory_space<vmem>>, vector<2x16xf32>
    %98 = vector.broadcast %89 : vector<2x8x1xf32> to vector<2x8x16xf32>
    %99 = arith.subf %85, %98 : vector<2x8x16xf32>
    %cst_42 = arith.constant 9.99999974E-6 : f32
    %100 = vector.broadcast %cst_42 : f32 to vector<2x8x1xf32>
    %101 = arith.addf %96, %100 : vector<2x8x1xf32>
    %102 = math.rsqrt %101 : vector<2x8x1xf32>
    %103 = vector.broadcast %102 : vector<2x8x1xf32> to vector<2x8x16xf32>
    %104 = arith.mulf %99, %103 : vector<2x8x16xf32>
    %105 = vector.extract_strided_slice %97 {offsets = [0, 0], sizes = [1, 16], strides = [1, 1]} : vector<2x16xf32> to vector<1x16xf32>
    %106 = vector.shape_cast %105 : vector<1x16xf32> to vector<1x1x16xf32>
    %107 = vector.broadcast %106 : vector<1x1x16xf32> to vector<2x8x16xf32>
    %108 = arith.mulf %104, %107 : vector<2x8x16xf32>
    %109 = vector.extract_strided_slice %97 {offsets = [1, 0], sizes = [1, 16], strides = [1, 1]} : vector<2x16xf32> to vector<1x16xf32>
    %110 = vector.shape_cast %109 : vector<1x16xf32> to vector<1x1x16xf32>
    %111 = vector.broadcast %110 : vector<1x1x16xf32> to vector<2x8x16xf32>
    %112 = arith.addf %108, %111 : vector<2x8x16xf32>
    %113 = vector.broadcast %6 : vector<2x8x1xf32> to vector<2x8x16xf32>
    %114 = arith.mulf %112, %113 : vector<2x8x16xf32>
    %115 = vector.extract_strided_slice %114 {offsets = [0, 7, 0], sizes = [2, 1, 16], strides = [1, 1, 1]} : vector<2x8x16xf32> to vector<2x1x16xf32>
    %116 = vector.shape_cast %115 : vector<2x1x16xf32> to vector<2x16xf32>
    %117 = tpu.concatenate %1, %27, %3, %116 in 1 : vector<2x16xf32>, vector<2x32xf32>, vector<2x2xf32>, vector<2x16xf32> -> vector<2x66xf32>
    %c0_43 = arith.constant 0 : index
    %c0_44 = arith.constant 0 : index
    %118 = vector.load %arg9[%c0_43, %c0_44] : memref<66x32xf32, #tpu.memory_space<vmem>>, vector<66x32xf32>
    %cst_45 = arith.constant dense<0.000000e+00> : vector<2x32xf32>
    %119 = tpu.matmul %117, %118, %cst_45 {dimension_numbers = #tpu.dot_dimension_numbers<[1], [0], [0], [1], [0, 0, 1, 1], [], []>} : vector<2x66xf32>, vector<66x32xf32>, vector<2x32xf32> -> vector<2x32xf32>
    %120 = vector.extract_strided_slice %8 {offsets = [3, 0], sizes = [1, 32], strides = [1, 1]} : vector<8x128xf32> to vector<1x32xf32>
    %121 = vector.broadcast %120 : vector<1x32xf32> to vector<2x32xf32>
    %122 = arith.addf %119, %121 : vector<2x32xf32>
    %cst_46 = arith.constant 0.000000e+00 : f32
    %123 = vector.broadcast %cst_46 : f32 to vector<2x32xf32>
    %124 = arith.maximumf %122, %123 : vector<2x32xf32>
    %c0_47 = arith.constant 0 : index
    %c0_48 = arith.constant 0 : index
    %125 = vector.load %arg10[%c0_47, %c0_48] : memref<32x96xf32, #tpu.memory_space<vmem>>, vector<32x96xf32>
    %cst_49 = arith.constant dense<0.000000e+00> : vector<2x96xf32>
    %126 = tpu.matmul %124, %125, %cst_49 {dimension_numbers = #tpu.dot_dimension_numbers<[1], [0], [0], [1], [0, 0, 1, 1], [], []>} : vector<2x32xf32>, vector<32x96xf32>, vector<2x96xf32> -> vector<2x96xf32>
    %127 = vector.extract_strided_slice %8 {offsets = [4, 0], sizes = [1, 96], strides = [1, 1]} : vector<8x128xf32> to vector<1x96xf32>
    %128 = vector.broadcast %127 : vector<1x96xf32> to vector<2x96xf32>
    %129 = arith.addf %126, %128 : vector<2x96xf32>
    %c0_50 = arith.constant 0 : index
    %c0_51 = arith.constant 0 : index
    %130 = vector.load %arg11[%c0_50, %c0_51] : memref<32x96xf32, #tpu.memory_space<vmem>>, vector<32x96xf32>
    %cst_52 = arith.constant dense<0.000000e+00> : vector<2x96xf32>
    %131 = tpu.matmul %2, %130, %cst_52 {dimension_numbers = #tpu.dot_dimension_numbers<[1], [0], [0], [1], [0, 0, 1, 1], [], []>} : vector<2x32xf32>, vector<32x96xf32>, vector<2x96xf32> -> vector<2x96xf32>
    %132 = vector.extract_strided_slice %8 {offsets = [5, 0], sizes = [1, 96], strides = [1, 1]} : vector<8x128xf32> to vector<1x96xf32>
    %133 = vector.broadcast %132 : vector<1x96xf32> to vector<2x96xf32>
    %134 = arith.addf %131, %133 : vector<2x96xf32>
    %135 = vector.extract_strided_slice %129 {offsets = [0, 0], sizes = [2, 32], strides = [1, 1]} : vector<2x96xf32> to vector<2x32xf32>
    %136 = vector.extract_strided_slice %134 {offsets = [0, 0], sizes = [2, 32], strides = [1, 1]} : vector<2x96xf32> to vector<2x32xf32>
    %137 = arith.addf %135, %136 : vector<2x32xf32>
    %138 = arith.negf %137 : vector<2x32xf32>
    %139 = math.exp %138 : vector<2x32xf32>
    %cst_53 = arith.constant 1.000000e+00 : f32
    %140 = vector.broadcast %cst_53 : f32 to vector<2x32xf32>
    %141 = arith.addf %140, %139 : vector<2x32xf32>
    %142 = arith.divf %140, %141 : vector<2x32xf32>
    %143 = vector.extract_strided_slice %129 {offsets = [0, 32], sizes = [2, 32], strides = [1, 1]} : vector<2x96xf32> to vector<2x32xf32>
    %144 = vector.extract_strided_slice %134 {offsets = [0, 32], sizes = [2, 32], strides = [1, 1]} : vector<2x96xf32> to vector<2x32xf32>
    %145 = arith.addf %143, %144 : vector<2x32xf32>
    %146 = arith.negf %145 : vector<2x32xf32>
    %147 = math.exp %146 : vector<2x32xf32>
    %cst_54 = arith.constant 1.000000e+00 : f32
    %148 = vector.broadcast %cst_54 : f32 to vector<2x32xf32>
    %149 = arith.addf %148, %147 : vector<2x32xf32>
    %150 = arith.divf %148, %149 : vector<2x32xf32>
    %151 = vector.extract_strided_slice %129 {offsets = [0, 64], sizes = [2, 32], strides = [1, 1]} : vector<2x96xf32> to vector<2x32xf32>
    %152 = vector.extract_strided_slice %134 {offsets = [0, 64], sizes = [2, 32], strides = [1, 1]} : vector<2x96xf32> to vector<2x32xf32>
    %153 = arith.mulf %142, %152 : vector<2x32xf32>
    %154 = arith.addf %151, %153 : vector<2x32xf32>
    %155 = math.tanh %154 : vector<2x32xf32>
    %cst_55 = arith.constant 1.000000e+00 : f32
    %156 = vector.broadcast %cst_55 : f32 to vector<2x32xf32>
    %157 = arith.subf %156, %150 : vector<2x32xf32>
    %158 = arith.mulf %157, %155 : vector<2x32xf32>
    %159 = arith.mulf %150, %2 : vector<2x32xf32>
    %160 = arith.addf %158, %159 : vector<2x32xf32>
    %c0_56 = arith.constant 0 : index
    %c0_57 = arith.constant 0 : index
    %161 = vector.load %arg12[%c0_56, %c0_57] : memref<32x20xf32, #tpu.memory_space<vmem>>, vector<32x20xf32>
    %cst_58 = arith.constant dense<0.000000e+00> : vector<2x20xf32>
    %162 = tpu.matmul %160, %161, %cst_58 {dimension_numbers = #tpu.dot_dimension_numbers<[1], [0], [0], [1], [0, 0, 1, 1], [], []>} : vector<2x32xf32>, vector<32x20xf32>, vector<2x20xf32> -> vector<2x20xf32>
    %163 = vector.extract_strided_slice %8 {offsets = [6, 0], sizes = [1, 20], strides = [1, 1]} : vector<8x128xf32> to vector<1x20xf32>
    %164 = vector.broadcast %163 : vector<1x20xf32> to vector<2x20xf32>
    %165 = arith.addf %162, %164 : vector<2x20xf32>
    %cst_59 = arith.constant 0.000000e+00 : f32
    %166 = vector.broadcast %cst_59 : f32 to vector<2x60xf32>
    %167 = tpu.concatenate %165, %160, %24, %166 in 1 : vector<2x20xf32>, vector<2x32xf32>, vector<2x16xf32>, vector<2x60xf32> -> vector<2x128xf32>
    %c0_60 = arith.constant 0 : index
    %c0_61 = arith.constant 0 : index
    %168 = vector.load %arg14[%c0_60, %c0_61] : memref<2x128xf32, #tpu.memory_space<vmem>>, vector<2x128xf32>
    tpu.vector_store %arg14[%c0_60, %c0_61], %167 {strides = array<i32>} : memref<2x128xf32, #tpu.memory_space<vmem>>, vector<2x128xf32>,
    return
  }
}

</mosaic_0001>

<bundles_post_ra>
// kernel: tpu_custom_call.1
= control target key start
LH: loop header
LB: loop body
LE: loop exit
PB: predicated region body
PF: predicated region fallthrough
CT: control target
= control target key end

     0   :  { %v1994_v3 = vmov 0.0|0.0   ;;  %vm1995_vm0 = vmmov 0   ;;  %v1996_v6 = vmov 0.0   ;;  %s2409_s0 = inlined_call_operand.vmem [shape: f32[2,50], index: 0, kind: input, shape index: {}]   ;;  %s2410_s1 = inlined_call_operand.vmem [shape: f32[2,16,32], index: 1, kind: input, shape index: {}]   ;;  %s2411_s2 = inlined_call_operand.vmem [shape: f32[2,8,16], index: 2, kind: input, shape index: {}]   ;;  %s2412_s3 = inlined_call_operand.vmem [shape: f32[2,8,1], index: 3, kind: input, shape index: {}]   ;;  %s2413_s4 = inlined_call_operand.vmem [shape: f32[2,8,8], index: 4, kind: input, shape index: {}]   ;;  %s2414_s5 = inlined_call_operand.vmem [shape: f32[48,16], index: 5, kind: input, shape index: {}]   ;;  %s2415_s6 = inlined_call_operand.vmem [shape: f32[16,48], index: 6, kind: input, shape index: {}]   ;;  %s2416_s7 = inlined_call_operand.vmem [shape: f32[16,16], index: 7, kind: input, shape index: {}]   ;;  %s2417_s8 = inlined_call_operand.vmem [shape: f32[2,16], index: 8, kind: input, shape index: {}]   ;;  %s2418_s9 = inlined_call_operand.vmem [shape: f32[66,32], index: 9, kind: input, shape index: {}]   ;;  %s2419_s10 = inlined_call_operand.vmem [shape: f32[32,96], index: 10, kind: input, shape index: {}]   ;;  %s2420_s11 = inlined_call_operand.vmem [shape: f32[32,96], index: 11, kind: input, shape index: {}]   ;;  %s2421_s12 = inlined_call_operand.vmem [shape: f32[32,20], index: 12, kind: input, shape index: {}]   ;;  %s2422_s13 = inlined_call_operand.vmem [shape: f32[8,128], index: 13, kind: input, shape index: {}]   ;;  %s2423_s14 = inlined_call_operand.hbm [shape: f32[2,128], index: 14, kind: output, shape index: {}]  }
   0x1   :  { %v60_v0 = vld [vmem:[%s2414_s5] sm:$0xff]  ;;  %v61_v1 = vld [vmem:[%s2414_s5 + $0x8] sm:$0xff]  ;;  %v62_v2 = vld [vmem:[%s2414_s5 + $0x10] sm:$0xff]  ;;  %1868 = vmatprep.subr.bf16.mxu0 %v1994_v3  ;;  %1743 = vmatprep.mubr.msk.f32.mxu0 %vm1995_vm0, %v1996_v6 }
   0x2   :  { %v1869_v4 = vpack.c.bf16 %v61_v1, %v60_v0  ;;  %v63_v5 = vld [vmem:[%s2414_s5 + $0x18] sm:$0xff]  ;;  %1880 = vmatprep.subr.bf16.mxu1 %v1994_v3  ;;  %1757 = vmatprep.mubr.msk.f32.mxu1 %vm1995_vm0, %v1996_v6 }
   0x3   :  { %19 = vsyncpa [#allocation3], 0  ;;  %v1872_v7 = vpack.c.bf16 %v63_v5, %v62_v2  ;;  %v64_v8 = vld [vmem:[%s2414_s5 + $0x20] sm:$0xff]  ;;  %v65_v9 = vld [vmem:[%s2414_s5 + $0x28] sm:$0xff]  ;;  %vm70_vm1 = vcmask 392192   ;;  %v66_v12 = vlaneseq  ;;  %vm144_vm2 = vcmask 123904  }
   0x4   :  { %1870 = vmatpush3.bf16.msra.mxu0 %v1869_v4  ;;  %v1875_v10 = vpack.c.bf16 %v65_v9, %v64_v8  ;;  %v2115_v11 = vld [vmem:[%s2409_s0] sm:$0x3]  ;;  %v50_v27 = vld [vmem:[%s2410_s1 + $0x8] sm:$0xff]  ;;  %v51_v29 = vld [vmem:[%s2410_s1 + $0x10] sm:$0xff]  ;;  %v1997_v36 = vmov 1966171168  }
   0x5   :  { %1871 = vmatprep.subr.bf16.mxu0 %v1994_v3  ;;  %v2122_v13 = vshrl.u32 %v66_v12, 7  ;;  %v2128_v15 = vld [vmem:[%s2422_s13] sm:$0xff]  ;;  %v52_v30 = vld [vmem:[%s2410_s1 + $0x18] sm:$0xff]  ;;  %v325_v33 = vld [vmem:[%s2415_s6 + $0x8] sm:$0xff]  ;;  %v158_v37 = vunpack.c.l.s4 %v1997_v36  ;;  %vm179_vm3 = vcmask 130048   ;;  %vm1232_vm4 = vcmask 1041409  }
   0x6   :  { %v49_v26 = vld [vmem:[%s2410_s1] sm:$0xff]  ;;  %v1881_v31 = vpack.c.bf16 %v52_v30, %v51_v29  ;;  %v2170_v47 = vld [vmem:[%s2411_s2 + $0x8] sm:$0xff]  ;;  %vm414_vm5 = vcmask 64512   ;;  %s1999_s27 = smov 104   ;;  %s2000_s0 = smov 96   ;;  %vm1266_vm6 = vcmask 1041408  }
   0x7   :  { %v68_v14 = vsub.s32 0, %v2122_v13  ;;  %v1878_v28 = vpack.c.bf16 %v50_v27, %v49_v26  ;;  %v324_v32 = vld [vmem:[%s2415_s6] sm:$0xff]  ;;  %v159_v38 = vunpack.c.0.s8 %v158_v37  ;;  %v328_v49 = vsub.s32 1, %v2122_v13  ;;  %v2213_v5 = vld [vmem:[%s2413_s4 + $0x8] sm:$0xff]  ;;  %s2002_s13 = smov 88   ;;  %s2003_s16 = smov 8  }
   0x8   :  { %1873 = vmatpush3.bf16.msra.mxu0 %v1872_v7  ;;  %1882 = vmatpush3.bf16.msra.mxu1 %v1881_v31  ;;  %v1883_v34 = vpack.c.bf16 %v325_v33, %v324_v32  ;;  %v2160_v46 = vld [vmem:[%s2411_s2] sm:$0xff]  ;;  %s1998_s2 = smov 112   ;;  %s2005_s18 = smov 16   ;;  %vm1247_vm7 = vcmask 408576   ;;  %vm1262_vm8 = vcmask 539648   ;;  %vm1349_vm9 = vcmask 261120  }
   0x9   :  { %1874 = vmatprep.subr.bf16.mxu0 %v1994_v3  ;;  %v69_v16 = vrot.slane %v2128_v15, %v68_v14  ;;  %v162_v39 = vsub.s32 %v159_v38, %v2122_v13  ;;  %v329_v54 = vrot.slane %v2128_v15, %v328_v49  ;;  %v2207_v63 = vld [vmem:[%s2413_s4] sm:$0xff]  ;;  %s2001_s4 = smov 120   ;;  %s2008_s17 = smov 116   ;;  %vm1623_vm10 = vcmask 162816  }
   0xa   :  { %1884 = vmatprep.subr.bf16.mxu1 %v1883_v34  ;;  %s2009_s19 = smov 52   ;;  %vm1625_vm11 = vcmask 424960   ;;  %vm1627_vm12 = vcmask 556032  }
   0xc   :  { %1876 = vmatpush3.bf16.msra.mxu0 %v1875_v10 }
   0xd   :  { %1877 = vmatprep.subr.bf16.mxu0 %v1994_v3 }
   0xf   :  { %1744 = vmatmul.mubr.msk.f32.vlgmr.msra.gmra.mrb[0].mxu0 %vm70_vm1, %v2115_v11 }
  0x10   :  { %1750 = vmatprep.mubr.msk.f32.mxu0 %vm1995_vm0, %v1996_v6  ;;  %1879 = vmatpush3.bf16.msra.mxu0 %v1878_v28 }
  0x11   :  { %1767 = vmatprep.subr.mxu0 %v1996_v6 }
  0xe2   :  { %v140_v17 = vpop.f32.mrb[0].mxu0 }
  0xe3   :  { %v141_v18 = vadd.f32 %v140_v17, %v69_v16  ;;  %v1745_v19 = vpop.f32.mrb[1].mxu0 }
  0xe5   :  { %v145_v20 = vsel %vm144_vm2, %v141_v18, -inf }
  0xe6   :  { %146 = vmax.xlane.f32.xlu0 %v145_v20 }
 0x173   :  { %v147_v21 = vpop.xlane.xlu0 %146 }
 0x174   :  { %v148_v22 = vsub.f32 %v141_v18, %v147_v21 }
 0x176   :  { %v149_v23 = vmul.f32 1.442695, %v148_v22 }
 0x178   :  { %1940 = vpow2.f32 %v149_v23 }
 0x182   :  { %v1941_v24 = vpop.eup %1940 }
 0x183   :  { %v151_v25 = vsel %vm144_vm2, %v1941_v24, 0.0 }
 0x184   :  { %152 = vadd.xlane.f32.xlu0 %v151_v25 }
 0x211   :  { %v153_v35 = vpop.xlane.xlu0 %152 }
 0x212   :  { %1942 = vrcp.f32 %v153_v35 }
 0x21c   :  { %v1943_v40 = vpop.eup %1942 }
 0x21d   :  { %v2153_v41 = vmul.f32 %v1943_v40, %v1941_v24 }
 0x21f   :  { %v163_v42 = vrot.slane %v2153_v41, %v162_v39 }
 0x221   :  { %v171_v43 = vrot.slane %v163_v42, %v162_v39  ;;  %v164_v44 = vcombine.high %v163_v42, %v163_v42 }
 0x223   :  { %1751 = vmatmul.mubr.msk.f32.vlgmr.msra.gmra.mrb[2].mxu0 %vm179_vm3, %v171_v43  ;;  %v178_v45 = vrot.slane %v164_v44, %v162_v39 }
 0x224   :  { %1769 = vmatprep.mubr.msk.f32.mxu0 %vm1995_vm0, %v1996_v6 }
 0x225   :  { %1758 = vmatmul.mubr.msk.f32.vlgmr.msra.gmra.mrb[0].mxu1 %vm179_vm3, %v178_v45 }
 0x226   :  { %1886 = vmatpush3.bf16.msra.mxu1 %v1883_v34  ;;  %1764 = vmatprep.mubr.msk.f32.mxu1 %vm179_vm3, %v2160_v46 }
 0x227   :  { %1772 = vmatprep.subr.mxu1 %v1996_v6 }
 0x229   :  { %1765 = vmatmul.mubr.msk.f32.vlgmr.msra.gmra.mrb[2].mxu1 %vm179_vm3, %v2170_v47 }
 0x22a   :  { %1774 = vmatprep.mubr.msk.f32.mxu1 %vm1995_vm0, %v1996_v6 }
 0x2f6   :  { %v248_v48 = vpop.f32.mrb[2].mxu0 }
 0x2f7   :  { %v1752_v50 = vpop.f32.mrb[3].mxu0 }
 0x2f8   :  { %v320_v51 = vpop.f32.mrb[0].mxu1 }
 0x2f9   :  { %v1231_v52 = vrot.slane %v320_v51, 7  ;;  %v1759_v53 = vpop.f32.mrb[1].mxu1 }
 0x2fb   :  { %v2182_v55 = vsel %vm1232_vm4, %v1231_v52, %v248_v48 }
 0x2fc   :  { %v1766_v56 = vpop.f32.mrb[2].mxu1 }
 0x2fd   :  { %v402_v57 = vpop.f32.mrb[3].mxu1  ;;  %v2188_v59 = vadd.f32 %v1766_v56, %v329_v54 }
 0x2fe   :  { %v2184_v58 = vadd.f32 %v402_v57, %v329_v54 }
 0x300   :  { %412 = vrot.lane.b32.xlu1 %v2184_v58, %s1998_s2 }
 0x304   :  { %490 = vrot.lane.b32.xlu1 %v2188_v59, %s1998_s2 }
 0x372   :  { %v413_v60 = vpop.permute.xlu1 %412 }
 0x373   :  { %1768 = vmatpush3.xpose.msk.msra.mxu0 %vm414_vm5, %v413_v60 }
 0x374   :  { %1777 = vmatprep.subr.mxu0 %v1996_v6 }
 0x376   :  { %1770 = vmatmul.mubr.msk.f32.vlgmr.msra.gmra.mrb[4].mxu0 %vm414_vm5, %v2184_v58  ;;  %v491_v61 = vpop.permute.xlu1 %490 }
 0x377   :  { %1773 = vmatpush3.xpose.msk.msra.mxu1 %vm414_vm5, %v491_v61  ;;  %1779 = vmatprep.mubr.msk.f32.mxu0 %vm1995_vm0, %v1996_v6 }
 0x378   :  { %1782 = vmatprep.subr.mxu1 %v1996_v6 }
 0x37a   :  { %1775 = vmatmul.mubr.msk.f32.vlgmr.msra.gmra.mrb[4].mxu1 %vm414_vm5, %v2188_v59 }
 0x37b   :  { %1784 = vmatprep.mubr.msk.f32.mxu1 %vm1995_vm0, %v1996_v6 }
 0x449   :  { %v485_v62 = vpop.f32.mrb[4].mxu0 }
 0x44a   :  { %v566_v0 = vmul.f32 0.35355338, %v485_v62  ;;  %v1771_v1 = vpop.f32.mrb[5].mxu0 }
 0x44c   :  { %v568_v2 = vadd.f32 %v566_v0, %v2207_v63 }
 0x44d   :  { %v562_v4 = vpop.f32.mrb[4].mxu1 }
 0x44e   :  { %v567_v7 = vmul.f32 0.35355338, %v562_v4  ;;  %v1776_v8 = vpop.f32.mrb[5].mxu1  ;;  %v570_v9 = vsel %vm414_vm5, %v568_v2, -inf }
 0x44f   :  { %571 = vmax.xlane.f32.xlu0 %v570_v9 }
 0x450   :  { %v569_v10 = vadd.f32 %v567_v7, %v2213_v5 }
 0x452   :  { %v573_v12 = vsel %vm414_vm5, %v569_v10, -inf }
 0x453   :  { %574 = vmax.xlane.f32.xlu1 %v573_v12 }
 0x464   :  { %746 = vrot.lane.b32.xlu1 %v2184_v58, %s1999_s27 }
 0x465   :  { %592 = vrot.lane.b32.xlu0 %v2184_v58, %s2000_s0 }
 0x469   :  { %668 = vrot.lane.b32.xlu0 %v2188_v59, %s2000_s0 }
 0x46d   :  { %824 = vrot.lane.b32.xlu0 %v2188_v59, %s1999_s27 }
 0x4dc   :  { %v572_v16 = vpop.xlane.xlu0 %571 }
 0x4dd   :  { %v576_v17 = vsub.f32 %v568_v2, %v572_v16 }
 0x4df   :  { %v578_v21 = vmul.f32 1.442695, %v576_v17 }
 0x4e0   :  { %v575_v18 = vpop.xlane.xlu1 %574  ;;  %v593_v19 = vpop.permute.xlu0 %592 }
 0x4e1   :  { %v577_v20 = vsub.f32 %v569_v10, %v575_v18  ;;  %1778 = vmatpush3.msra.mxu0 %v593_v19  ;;  %v1089_v18 = vld [vmem:[%s2416_s7 + $0x8] sm:$0xff] }
 0x4e2   :  { %1787 = vmatprep.subr.mxu0 %v1996_v6 }
 0x4e3   :  { %v580_v22 = vmul.f32 1.442695, %v577_v20 }
 0x4e4   :  { %v669_v23 = vpop.permute.xlu0 %668  ;;  %v747_v37 = vpop.permute.xlu1 %746 }
 0x4e5   :  { %1944 = vpow2.f32 %v580_v22  ;;  %1783 = vmatpush3.msra.mxu1 %v669_v23 }
 0x4e6   :  { %1792 = vmatprep.subr.mxu1 %v1996_v6  ;;  %1946 = vpow2.f32 %v578_v21 }
 0x4e8   :  { %v825_v28 = vpop.permute.xlu0 %824 }
 0x4ef   :  { %v1945_v24 = vpop.eup %1944 }
 0x4f0   :  { %v585_v25 = vsel %vm414_vm5, %v1945_v24, 0.0  ;;  %v1947_v26 = vpop.eup %1946 }
 0x4f1   :  { %586 = vadd.xlane.f32.xlu0 %v585_v25  ;;  %v582_v27 = vsel %vm414_vm5, %v1947_v26, 0.0 }
 0x4f5   :  { %583 = vadd.xlane.f32.xlu0 %v582_v27 }
 0x50b   :  { %744 = vrot.lane.b32.xlu0 %v2184_v58, %s2001_s4 }
 0x50f   :  { %822 = vrot.lane.b32.xlu0 %v2188_v59, %s2001_s4 }
 0x57e   :  { %v587_v29 = vpop.xlane.xlu0 %586 }
 0x57f   :  { %1948 = vrcp.f32 %v587_v29  ;;  %v1092_v29 = vsub.s32 2, %v2122_v13 }
 0x582   :  { %v584_v30 = vpop.xlane.xlu0 %583 }
 0x583   :  { %1950 = vrcp.f32 %v584_v30  ;;  %v1093_v30 = vrot.slane %v2128_v15, %v1092_v29 }
 0x586   :  { %v745_v32 = vpop.permute.xlu0 %744 }
 0x589   :  { %v1949_v31 = vpop.eup %1948 }
 0x58a   :  { %v591_v33 = vmul.f32 %v1949_v31, %v1945_v24  ;;  %v823_v36 = vpop.permute.xlu0 %822 }
 0x58c   :  { %1785 = vmatmul.mubr.msk.f32.vlgmr.msra.gmra.mrb[6].mxu1 %vm414_vm5, %v591_v33 }
 0x58d   :  { %v1951_v34 = vpop.eup %1950  ;;  %1793 = vmatpush3.xpose.msk.msra.mxu1 %vm414_vm5, %v825_v28  ;;  %1794 = vmatprep.mubr.msk.f32.mxu1 %vm1995_vm0, %v1996_v6  ;;  %v2004_v28 = vmov 0  }
 0x58e   :  { %v590_v35 = vmul.f32 %v1951_v34, %v1947_v26  ;;  %1802 = vmatprep.subr.mxu1 %v1996_v6  ;;  %1939 = vset.pattern.permute.xlu1 %v2004_v28 }
 0x58f   :  { %1938 = vset.pattern.permute.xlu0 %v2004_v28 }
 0x590   :  { %1780 = vmatmul.mubr.msk.f32.vlgmr.msra.gmra.mrb[6].mxu0 %vm414_vm5, %v590_v35  ;;  %1795 = vmatmul.mubr.msk.f32.vlgmr.msra.gmra.mrb[8].mxu1 %vm414_vm5, %v823_v36 }
 0x591   :  { %1788 = vmatpush3.xpose.msk.msra.mxu0 %vm414_vm5, %v747_v37  ;;  %1789 = vmatprep.mubr.msk.f32.mxu0 %vm1995_vm0, %v1996_v6 }
 0x592   :  { %1797 = vmatprep.subr.mxu0 %v1996_v6  ;;  %1804 = vmatprep.mubr.msk.f32.mxu1 %vm1995_vm0, %v1996_v6 }
 0x594   :  { %1790 = vmatmul.mubr.msk.f32.vlgmr.msra.gmra.mrb[8].mxu0 %vm414_vm5, %v745_v32 }
 0x595   :  { %1799 = vmatprep.mubr.msk.f32.mxu0 %vm1995_vm0, %v1996_v6 }
 0x65f   :  { %v2246_v38 = vpop.f32.mrb[6].mxu1 }
 0x660   :  { %v1786_v39 = vpop.f32.mrb[7].mxu1 }
 0x661   :  { %v56_v39 = vld [vmem:[%s2412_s3 + $0x8] sm:$0xff] }
 0x663   :  { %v664_v40 = vpop.f32.mrb[6].mxu0  ;;  %v896_v42 = vpop.f32.mrb[8].mxu1 }
 0x664   :  { %v901_v43 = vmul.f32 0.35355338, %v896_v42  ;;  %v1781_v44 = vpop.f32.mrb[7].mxu0  ;;  %v1796_v45 = vpop.f32.mrb[9].mxu1 }
 0x666   :  { %v903_v48 = vadd.f32 %v901_v43, %v2213_v5 }
 0x667   :  { %v818_v50 = vpop.f32.mrb[8].mxu0 }
 0x668   :  { %v900_v51 = vmul.f32 0.35355338, %v818_v50  ;;  %v1791_v52 = vpop.f32.mrb[9].mxu0  ;;  %v907_v53 = vsel %vm414_vm5, %v903_v48, -inf }
 0x669   :  { %908 = vmax.xlane.f32.xlu1 %v907_v53  ;;  %v55_v52 = vld [vmem:[%s2412_s3] sm:$0xff]  ;;  %v1250_v53 = vld [vmem:[%s2418_s9 + $0x8] sm:$0xff] }
 0x66a   :  { %v902_v54 = vadd.f32 %v900_v51, %v2207_v63 }
 0x66c   :  { %v904_v56 = vsel %vm414_vm5, %v902_v54, -inf }
 0x66d   :  { %905 = vmax.xlane.f32.xlu0 %v904_v56 }
 0x67a   :  { %1002 = vrot.lane.b32.xlu1 %v2188_v59, %s2002_s13 }
 0x6f6   :  { %v909_v57 = vpop.xlane.xlu1 %908 }
 0x6f7   :  { %v911_v60 = vsub.f32 %v903_v48, %v909_v57  ;;  %v1252_v57 = vld [vmem:[%s2418_s9 + $0x18] sm:$0xff] }
 0x6f9   :  { %v914_v61 = vmul.f32 1.442695, %v911_v60 }
 0x6fa   :  { %v1003_v62 = vpop.permute.xlu1 %1002  ;;  %v906_v0 = vpop.xlane.xlu0 %905 }
 0x6fb   :  { %1952 = vpow2.f32 %v914_v61  ;;  %v910_v1 = vsub.f32 %v902_v54, %v906_v0  ;;  %1803 = vmatpush3.msra.mxu1 %v1003_v62  ;;  %v1251_v54 = vld [vmem:[%s2418_s9 + $0x10] sm:$0xff]  ;;  %v1253_v61 = vld [vmem:[%s2418_s9 + $0x20] sm:$0xff]  ;;  %v1254_v62 = vld [vmem:[%s2418_s9 + $0x28] sm:$0xff] }
 0x6fc   :  { %1891 = vmatprep.subr.bf16.mxu1 %v1994_v3  ;;  %v1895_v60 = vpack.c.bf16 %v1252_v57, %v1251_v54  ;;  %v1898_v0 = vpack.c.bf16 %v1254_v62, %v1253_v61 }
 0x6fd   :  { %v912_v2 = vmul.f32 1.442695, %v910_v1  ;;  %v1255_v1 = vld [vmem:[%s2418_s9 + $0x30] sm:$0xff] }
 0x6ff   :  { %1954 = vpow2.f32 %v912_v2  ;;  %v1256_v2 = vld [vmem:[%s2418_s9 + $0x38] sm:$0xff] }
 0x705   :  { %v1953_v4 = vpop.eup %1952 }
 0x706   :  { %v919_v63 = vsel %vm414_vm5, %v1953_v4, 0.0 }
 0x707   :  { %920 = vadd.xlane.f32.xlu0 %v919_v63 }
 0x709   :  { %v1955_v5 = vpop.eup %1954 }
 0x70a   :  { %v916_v7 = vsel %vm414_vm5, %v1955_v5, 0.0 }
 0x70b   :  { %917 = vadd.xlane.f32.xlu0 %v916_v7 }
 0x721   :  { %926 = vrot.lane.b32.xlu0 %v2184_v58, %s2002_s13  ;;  %v1088_v58 = vld [vmem:[%s2416_s7] sm:$0xff] }
 0x722   :  { %v1887_v19 = vpack.c.bf16 %v1089_v18, %v1088_v58 }
 0x794   :  { %v921_v59 = vpop.xlane.xlu0 %920 }
 0x795   :  { %1956 = vrcp.f32 %v921_v59 }
 0x798   :  { %v918_v8 = vpop.xlane.xlu0 %917 }
 0x799   :  { %1958 = vrcp.f32 %v918_v8 }
 0x79c   :  { %v927_v9 = vpop.permute.xlu0 %926 }
 0x79d   :  { %1798 = vmatpush3.msra.mxu0 %v927_v9 }
 0x79e   :  { %1888 = vmatprep.subr.bf16.mxu0 %v1887_v19 }
 0x79f   :  { %v1957_v10 = vpop.eup %1956 }
 0x7a0   :  { %v925_v12 = vmul.f32 %v1957_v10, %v1953_v4  ;;  %v1901_v4 = vpack.c.bf16 %v1256_v2, %v1255_v1  ;;  %v1198_v10 = vld [vmem:[%s2417_s8] sm:$0x3]  ;;  %v1347_v2 = vsub.s32 4, %v2122_v13 }
 0x7a1   :  { %v1214_v58 = vrot.slane %v1198_v10, %v328_v49 }
 0x7a2   :  { %1805 = vmatmul.mubr.msk.f32.vlgmr.msra.gmra.mrb[10].mxu1 %vm414_vm5, %v925_v12  ;;  %v1208_v12 = vrot.slane %v1198_v10, %v68_v14  ;;  %v1342_v14 = vld [vmem:[%s2419_s10 + $0x8] sm:$0xff] }
 0x7a3   :  { %v1959_v16 = vpop.eup %1958  ;;  %1832 = vmatprep.mubr.msk.f32.mxu1 %vm1995_vm0, %v1996_v6 }
 0x7a4   :  { %v924_v17 = vmul.f32 %v1959_v16, %v1955_v5 }
 0x7a6   :  { %1800 = vmatmul.mubr.msk.f32.vlgmr.msra.gmra.mrb[10].mxu0 %vm414_vm5, %v924_v17 }
 0x7a7   :  { %1890 = vmatpush3.bf16.msra.mxu0 %v1887_v19  ;;  %v1257_v19 = vld [vmem:[%s2418_s9 + $0x40] sm:$0x3] }
 0x7a8   :  { %1903 = vmatprep.subr.bf16.mxu0 %v1994_v3 }
 0x875   :  { %v1074_v20 = vpop.f32.mrb[10].mxu1 }
 0x876   :  { %v1806_v21 = vpop.f32.mrb[11].mxu1 }
 0x877   :  { %v1341_v21 = vld [vmem:[%s2419_s10] sm:$0xff] }
 0x879   :  { %v998_v22 = vpop.f32.mrb[10].mxu0 }
 0x87a   :  { %1080 = vrot.lane.b32.xlu1 %v998_v22, %s2003_s16  ;;  %v1801_v23 = vpop.f32.mrb[11].mxu0 }
 0x87e   :  { %1082 = vrot.lane.b32.xlu1 %v1074_v20, %s2003_s16 }
 0x8ec   :  { %v1081_v24 = vpop.permute.xlu1 %1080 }
 0x8ed   :  { %v1086_v25 = vsel %vm414_vm5, %v664_v40, %v1081_v24  ;;  %v1904_v24 = vpack.c.bf16 %v1342_v14, %v1341_v21  ;;  %v1537_v21 = vld [vmem:[%s2421_s12 + $0x18] sm:$0xff] }
 0x8ee   :  { %1811 = vmatprep.mubr.msk.f32.mxu0 %vm179_vm3, %v1086_v25 }
 0x8f0   :  { %v1083_v26 = vpop.permute.xlu1 %1082 }
 0x8f1   :  { %v1087_v27 = vsel %vm414_vm5, %v2246_v38, %v1083_v26 }
 0x8f2   :  { %1812 = vmatmul.mubr.msk.f32.vlgmr.msra.gmra.mrb[12].mxu0 %vm179_vm3, %v1087_v27 }
 0x8f3   :  { %1843 = vmatprep.mubr.msk.f32.mxu0 %vm1995_vm0, %v1996_v6  ;;  %1905 = vmatpush3.bf16.msra.mxu0 %v1904_v24 }
 0x8f4   :  { %1906 = vmatprep.subr.bf16.mxu0 %v1994_v3 }
 0x9c5   :  { %v1813_v31 = vpop.f32.mrb[12].mxu0 }
 0x9c6   :  { %v1172_v32 = vadd.f32 %v1813_v31, %v1093_v30  ;;  %v1166_v33 = vpop.f32.mrb[13].mxu0 }
 0x9c7   :  { %v1167_v34 = vadd.f32 %v1166_v33, %v1093_v30 }
 0x9c8   :  { %v1176_v35 = vadd.f32 %v1172_v32, %v2170_v47 }
 0x9c9   :  { %v1175_v36 = vadd.f32 %v1167_v34, %v2160_v46 }
 0x9ca   :  { %v1180_v37 = vsel %vm179_vm3, %v1176_v35, 0.0 }
 0x9cb   :  { %1181 = vadd.xlane.f32.xlu1 %v1180_v37  ;;  %v1177_v38 = vsel %vm179_vm3, %v1175_v36, 0.0 }
 0x9cc   :  { %1178 = vadd.xlane.f32.xlu0 %v1177_v38  ;;  %v1343_v38 = vld [vmem:[%s2419_s10 + $0x10] sm:$0xff] }
 0x9dc   :  { %1224 = vperm.xlu1 %1939, %v56_v39   ;;  %v1344_v39 = vld [vmem:[%s2419_s10 + $0x18] sm:$0xff] }
 0x9e0   :  { %1234 = vrot.lane.b32.xlu1 %v2182_v55, %s2005_s18  ;;  %v1249_v55 = vld [vmem:[%s2418_s9] sm:$0xff]  ;;  %s2006_s9 = smov 50  }
 0x9e1   :  { %v1892_v56 = vpack.c.bf16 %v1250_v53, %v1249_v55  ;;  %v1426_v55 = vld [vmem:[%s2420_s11 + $0x18] sm:$0xff] }
 0x9e3   :  { %1893 = vmatpush3.bf16.msra.mxu1 %v1892_v56 }
 0x9e4   :  { %1894 = vmatprep.subr.bf16.mxu1 %v1994_v3 }
 0x9e7   :  { %1896 = vmatpush3.bf16.msra.mxu1 %v1895_v60  ;;  %v1429_v60 = vsub.s32 5, %v2122_v13 }
 0x9e8   :  { %1897 = vmatprep.subr.bf16.mxu1 %v1994_v3 }
 0x9e9   :  { %v1430_v61 = vrot.slane %v2128_v15, %v1429_v60 }
 0x9eb   :  { %1899 = vmatpush3.bf16.msra.mxu1 %v1898_v0 }
 0x9ec   :  { %1900 = vmatprep.subr.bf16.mxu1 %v1994_v3 }
 0x9ef   :  { %1902 = vmatpush3.bf16.msra.mxu1 %v1901_v4 }
 0x9f0   :  { %1830 = vmatprep.subr.mxu1 %v1996_v6 }
 0x9f3   :  { %1831 = vmatpush3.msk.msra.mxu1 %vm1266_vm6, %v1257_v19  ;;  %v1536_v19 = vld [vmem:[%s2421_s12 + $0x10] sm:$0xff] }
 0x9f4   :  { %1915 = vmatprep.subr.bf16.mxu1 %v1994_v3  ;;  %v1919_v14 = vpack.c.bf16 %v1537_v21, %v1536_v19 }
 0xa58   :  { %v1182_v40 = vpop.xlane.xlu1 %1181 }
 0xa59   :  { %v1185_v42 = vmul.f32 0.0625, %v1182_v40  ;;  %v1179_v47 = vpop.xlane.xlu0 %1178  ;;  %v1907_v40 = vpack.c.bf16 %v1344_v39, %v1343_v38 }
 0xa5a   :  { %v1184_v43 = vmul.f32 0.0625, %v1179_v47 }
 0xa5b   :  { %v1187_v46 = vsub.f32 %v1176_v35, %v1185_v42  ;;  %1908 = vmatpush3.bf16.msra.mxu0 %v1907_v40  ;;  %v1260_v42 = vsub.s32 3, %v2122_v13 }
 0xa5c   :  { %v1186_v44 = vsub.f32 %v1175_v36, %v1184_v43  ;;  %v1225_v25 = vpop.permute.xlu1 %1224  ;;  %1909 = vmatprep.subr.bf16.mxu0 %v1994_v3  ;;  %v1423_v43 = vld [vmem:[%s2420_s11] sm:$0xff] }
 0xa5d   :  { %v1189_v45 = vmul.f32 %v1187_v46, %v1187_v46  ;;  %v1261_v47 = vrot.slane %v2128_v15, %v1260_v42 }
 0xa5e   :  { %v1188_v50 = vmul.f32 %v1186_v44, %v1186_v44 }
 0xa5f   :  { %v1193_v48 = vsel %vm179_vm3, %v1189_v45, 0.0 }
 0xa60   :  { %1194 = vadd.xlane.f32.xlu0 %v1193_v48  ;;  %v1190_v51 = vsel %vm179_vm3, %v1188_v50, 0.0  ;;  %v1235_v33 = vpop.permute.xlu1 %1234 }
 0xa61   :  { %v1245_v34 = vsel %vm179_vm3, %v2115_v11, %v1235_v33 }
 0xa62   :  { %v1246_v35 = vsel %vm70_vm1, %v1245_v34, %v2115_v11 }
 0xa64   :  { %1191 = vadd.xlane.f32.xlu0 %v1190_v51 }
 0xa7a   :  { %1219 = vperm.xlu0 %1938, %v55_v52   ;;  %v1425_v52 = vld [vmem:[%s2420_s11 + $0x10] sm:$0xff] }
 0xa7b   :  { %v1913_v53 = vpack.c.bf16 %v1426_v55, %v1425_v52 }
 0xaed   :  { %v1195_v63 = vpop.xlane.xlu0 %1194 }
 0xaee   :  { %v1197_v5 = vmul.f32 0.0625, %v1195_v63 }
 0xaf0   :  { %v1200_v7 = vadd.f32 1e-05, %v1197_v5 }
 0xaf1   :  { %v1192_v59 = vpop.xlane.xlu0 %1191 }
 0xaf2   :  { %1960 = vrsqrt.f32 %v1200_v7  ;;  %v1196_v8 = vmul.f32 0.0625, %v1192_v59 }
 0xaf4   :  { %v1199_v9 = vadd.f32 1e-05, %v1196_v8 }
 0xaf6   :  { %1962 = vrsqrt.f32 %v1199_v9 }
 0xaf9   :  { %v1220_v26 = vpop.permute.xlu0 %1219 }
 0xafc   :  { %v1961_v16 = vpop.eup %1960 }
 0xafd   :  { %v1204_v17 = vmul.f32 %v1961_v16, %v1187_v46  ;;  %v1424_v46 = vld [vmem:[%s2420_s11 + $0x8] sm:$0xff]  ;;  %s2007_s11 = smov 64  }
 0xafe   :  { %v1910_v50 = vpack.c.bf16 %v1424_v46, %v1423_v43 }
 0xaff   :  { %v1210_v18 = vmul.f32 %v1208_v12, %v1204_v17 }
 0xb00   :  { %v1963_v20 = vpop.eup %1962 }
 0xb01   :  { %v1203_v22 = vmul.f32 %v1963_v20, %v1186_v44  ;;  %v1216_v23 = vadd.f32 %v1214_v58, %v1210_v18  ;;  %v1535_v18 = vld [vmem:[%s2421_s12 + $0x8] sm:$0xff] }
 0xb03   :  { %v1209_v49 = vmul.f32 %v1208_v12, %v1203_v22  ;;  %v1228_v28 = vmul.f32 %v1225_v25, %v1216_v23 }
 0xb05   :  { %v1215_v27 = vadd.f32 %v1214_v58, %v1209_v49  ;;  %v1240_v31 = vrot.slane %v1228_v28, 6  ;;  %v1534_v58 = vld [vmem:[%s2421_s12] sm:$0xff]  ;;  %s2010_s12 = smov [#allocation2]  }
 0xb06   :  { %v1916_v20 = vpack.c.bf16 %v1535_v18, %v1534_v58 }
 0xb07   :  { %v1227_v29 = vmul.f32 %v1220_v26, %v1215_v27 }
 0xb09   :  { %v1239_v30 = vrot.slane %v1227_v29, 7 }
 0xb0b   :  { %v1241_v32 = vsel %vm1232_vm4, %v1240_v31, %v1239_v30 }
 0xb0c   :  { %1242 = vrot.lane.b32.xlu1 %v1241_v32, %s2006_s9 }
 0xb10   :  { %1431 = vrot.lane.b32.xlu1 %v2115_v11, %s1998_s2 }
 0xb7e   :  { %v1243_v36 = vpop.permute.xlu1 %1242 }
 0xb7f   :  { %v1248_v37 = vsel %vm1247_vm7, %v1246_v35, %v1243_v36 }
 0xb80   :  { %1833 = vmatmul.mubr.msk.f32.vlgmr.msra.gmra.mrb[12].mxu1 %vm1262_vm8, %v1248_v37 }
 0xb81   :  { %1865 = vmatprep.mubr.msk.f32.mxu1 %vm1995_vm0, %v1996_v6  ;;  %1917 = vmatpush3.bf16.msra.mxu1 %v1916_v20 }
 0xb82   :  { %v1432_v54 = vpop.permute.xlu1 %1431  ;;  %1918 = vmatprep.subr.bf16.mxu1 %v1994_v3 }
 0xb85   :  { %1920 = vmatpush3.bf16.msra.mxu1 %v1919_v14 }
 0xc53   :  { %v1336_v44 = vpop.f32.mrb[12].mxu1 }
 0xc54   :  { %v1337_v45 = vadd.f32 %v1336_v44, %v1261_v47  ;;  %v1834_v48 = vpop.f32.mrb[13].mxu1 }
 0xc56   :  { %v1340_v51 = vmax.f32 %v1337_v45, 0.0 }
 0xc58   :  { %1844 = vmatmul.mubr.msk.f32.vlgmr.msra.gmra.mrb[14].mxu0 %vm1349_vm9, %v1340_v51 }
 0xc59   :  { %1911 = vmatpush3.bf16.msra.mxu0 %v1910_v50  ;;  %1854 = vmatprep.mubr.msk.f32.mxu0 %vm1995_vm0, %v1996_v6  ;;  %v1348_v6 = vrot.slane %v2128_v15, %v1347_v2 }
 0xc5a   :  { %1912 = vmatprep.subr.bf16.mxu0 %v1994_v3  ;;  %v1540_v3 = vsub.s32 6, %v2122_v13 }
 0xc5d   :  { %1914 = vmatpush3.bf16.msra.mxu0 %v1913_v53 }
 0xc60   :  { %1855 = vmatmul.mubr.msk.f32.vlgmr.msra.gmra.mrb[16].mxu0 %vm1349_vm9, %v1432_v54 }
 0xd2b   :  { %v1419_v56 = vpop.f32.mrb[14].mxu0 }
 0xd2c   :  { %v1845_v57 = vpop.f32.mrb[15].mxu0  ;;  %v1420_v4 = vadd.f32 %v1419_v56, %v1348_v6 }
 0xd33   :  { %v1501_v62 = vpop.f32.mrb[16].mxu0 }
 0xd34   :  { %v1502_v0 = vadd.f32 %v1501_v62, %v1430_v61  ;;  %v1856_v1 = vpop.f32.mrb[17].mxu0 }
 0xd36   :  { %1513 = vrot.lane.b32.xlu1 %v1502_v0, %s2007_s11  ;;  %v1505_v63 = vadd.f32 %v1502_v0, %v1420_v4 }
 0xd38   :  { %v1667_v5 = vmul.f32 -1.442695, %v1505_v63 }
 0xd3a   :  { %1964 = vpow2.f32 %v1667_v5 }
 0xd44   :  { %v1965_v7 = vpop.eup %1964 }
 0xd45   :  { %v1509_v59 = vadd.f32 1.0, %v1965_v7 }
 0xd47   :  { %1966 = vrcp.f32 %v1509_v59 }
 0xd51   :  { %v1967_v8 = vpop.eup %1966 }
 0xd52   :  { %v1523_v23 = vsub.f32 1.0, %v1967_v8 }
 0xda8   :  { %v1514_v9 = vpop.permute.xlu1 %1513 }
 0xda9   :  { %v1516_v10 = vmul.f32 %v1967_v8, %v1514_v9 }
 0xdab   :  { %1518 = vrot.lane.b32.xlu1 %v1516_v10, %s2007_s11 }
 0xe1d   :  { %v1519_v12 = vpop.permute.xlu1 %1518 }
 0xe1e   :  { %v1521_v16 = vadd.f32 %v1519_v12, %v1420_v4 }
 0xe20   :  { %1968 = vtanh.f32 %v1521_v16 }
 0xe2a   :  { %v1969_v17 = vpop.eup %1968 }
 0xe2b   :  { %1525 = vrot.lane.b32.xlu1 %v1969_v17, %s2000_s0 }
 0xe2f   :  { %1529 = vrot.lane.b32.xlu1 %v2115_v11, %s2005_s18  ;;  %v1541_v11 = vrot.slane %v2128_v15, %v1540_v3  ;;  %s1636_s18 = sshll.u32 %s2010_s12, 4  ;;  %s1637_s18 = int_to_ptr.vmem [resolvable:$true] %s1636_s18 }
 0xe30   :  { %p1975_p1 = scmp.lt.s32.totalorder %s1637_s18, %s1637_s18 }
 0xe9d   :  { %v1526_v22 = vpop.permute.xlu1 %1525 }
 0xe9e   :  { %v1528_v49 = vmul.f32 %v1526_v22, %v1523_v23 }
 0xea1   :  { %v1530_v24 = vpop.permute.xlu1 %1529 }
 0xea2   :  { %v1532_v25 = vmul.f32 %v1967_v8, %v1530_v24 }
 0xea4   :  { %v1533_v26 = vadd.f32 %v1532_v25, %v1528_v49 }
 0xea6   :  { %1617 = vrot.lane.b32.xlu1 %v1533_v26, %s2008_s17  ;;  %1543 = vrot.lane.b32.xlu0 %v1533_v26, %s2000_s0  ;;  %s1970_s0 = scalar_lea.vmem %s1637_s18, 32 }
 0xea7   :  { %p1971_p0 = scmp.ne.s32.totalorder %s1637_s18, %s1970_s0  ;;  %p1976_p2 = scmp.lt.s32.totalorder %s1970_s0, %s1970_s0 }
 0xea9   :  { %p1977_p3 = por %p1976_p2, %p1975_p1 }
 0xeaa   :  { %1620 = vrot.lane.b32.xlu0 %v2153_v41, %s2009_s19 }
 0xeab   :  { %p1978_p4 = pnand %p1977_p3, %p1971_p0 }
 0xf18   :  { %v1544_v27 = vpop.permute.xlu0 %1543  ;;  %v1618_v31 = vpop.permute.xlu1 %1617 }
 0xf19   :  { %1866 = vmatmul.mubr.msk.f32.vlgmr.msra.gmra.mrb[14].mxu1 %vm1349_vm9, %v1544_v27 }
 0xf1c   :  { %v1621_v32 = vpop.permute.xlu0 %1620 }
 0xfec   :  { %v1613_v28 = vpop.f32.mrb[14].mxu1 }
 0xfed   :  { %v1614_v29 = vadd.f32 %v1613_v28, %v1541_v11  ;;  %v1867_v30 = vpop.f32.mrb[15].mxu1 }
 0xfef   :  { %v1624_v33 = vsel %vm1623_vm10, %v1614_v29, %v1618_v31 }
 0xff0   :  { %v1626_v34 = vsel %vm1625_vm11, %v1624_v33, %v1621_v32 }
 0xff1   :  { %v1628_v41 = vsel %vm1627_vm12, %v1626_v34, 0.0 }
 0xff2   :  { %1629 = vst [vmem:[#allocation2] sm:$0x3] %v1628_v41 }
 0xff3   :  { %1981 = shalt.err (!%p1978_p4)
}
 0xff4   :  { %s1982_s21 = scalar_lea.hbm %s2423_s14, 32 }
 0xff5   :  { %p1983_p5 = scmp.ne.s32.totalorder %s2423_s14, %s1982_s21  ;;  %p1986_p6 = scmp.lt.u32.totalorder %s1982_s21, %s2423_s14 }
 0xff7   :  { %p1988_p7 = pnand %p1986_p6, %p1983_p5 }
 0xff9   :  { %1991 = shalt.err (!%p1988_p7)
}
 0xffa   :  { %1639 = dma.vmem_to_hbm [thread:$0]  %s1637_s18, 32, %s2423_s14, [#allocation3]  }
 0xffb   :  { %1992 = dma.done.wait [#allocation3], 32  }
 0xffc   :  { %1993 = vsyncadd [#allocation3], 4294967264 }
 0xffd   :  { %1643 = vsyncpa [#allocation3], 1 }

</bundles_post_ra>
